<compile_context>
chip_gen: v5e
topology: v5e:2x2
jax: 0.10.0
libtpu: 0.0.40
codegen_flags: <defaults>
</compile_context>

<pallas_src>
import functools

import jax
import jax.numpy as jnp
from jax.experimental import pallas as pl
from jax.experimental.pallas import tpu as pltpu

_LANE = 128


def _round_up(x: int, m: int) -> int:
    return ((x + m - 1) // m) * m


def _vmem_limit_bytes() -> int:
    """Generation-dependent scoped-VMEM budget (leave headroom for compiler)."""
    try:
        cap = int(pltpu.get_tpu_info().vmem_capacity_bytes)
    except Exception:
        cap = 64 * 1024 * 1024  # conservative (v7x-sized) default
    return max(32 * 1024 * 1024, min(cap * 3 // 4, 100 * 1024 * 1024))


def _pick_tile(total: int, candidates, fits):
    """Largest candidate that divides `total` and passes the VMEM fit check.

    `total` is always a multiple of 128 here, so 128 is a guaranteed divisor.
    If nothing fits, fall back to the smallest dividing candidate.
    """
    fallback = None
    for c in candidates:  # descending
        if c <= total and total % c == 0:
            if fits(c):
                return c
            fallback = c
    return fallback if fallback is not None else total


# ---------------------------------------------------------------------------
# Kernel 1: tall matmul  out = x @ W + bias   (rows tiled, W/bias resident)
# ---------------------------------------------------------------------------
def _matmul_bias_kernel(x_ref, w_ref, b_ref, o_ref):
    acc = jnp.dot(x_ref[...], w_ref[...], preferred_element_type=jnp.float32)
    o_ref[...] = (acc + b_ref[...]).astype(o_ref.dtype)


# ---------------------------------------------------------------------------
# Kernel 2: row-tiled aggregation  out = (adj @ feat) / (rowsum(adj)+1) + bias
# ---------------------------------------------------------------------------
def _aggregate_kernel(adj_ref, feat_ref, b_ref, o_ref, *, approx_recip):
    adj = adj_ref[...]                      # (TM, Np)
    # denom = neighbor count (+1), accumulated in f32 on the XLU.
    denom = jnp.sum(adj.astype(jnp.float32), axis=-1, keepdims=True) + 1.0
    # Neighborhood aggregation on the MXU, f32 accumulation.
    agg = jnp.dot(adj, feat_ref[...], preferred_element_type=jnp.float32)
    if approx_recip:
        out = agg * pl.reciprocal(denom, approx=True) + b_ref[...]
    else:
        out = agg / denom + b_ref[...]
    o_ref[...] = out.astype(o_ref.dtype)


def graph_convolution(text, adj, weight, bias=None, *, compute_dtype=jnp.bfloat16):
    """GCN layer forward.

    text:   [B, N, Fin]
    adj:    [B, N, N]   (non-negative weights assumed, so denom >= 1)
    weight: [Fin, Fout]
    bias:   [Fout] or None
    Returns [B, N, Fout] float32.
    """
    B, N, Fin = text.shape
    Fout = weight.shape[1]
    approx_recip = (compute_dtype != jnp.float32)

    # ---- lane-aligned padding (multiples of 128 everywhere) -----------------
    Np = _round_up(N, _LANE)
    Fin_p = _round_up(Fin, _LANE)
    Fout_p = _round_up(Fout, _LANE)
    M = B * Np

    vmem_limit = _vmem_limit_bytes()
    bytes_c = jnp.dtype(compute_dtype).itemsize

    text_c = text.astype(compute_dtype)
    adj_c = adj.astype(compute_dtype)
    w_c = weight.astype(compute_dtype)

    if Np != N or Fin_p != Fin:
        text_c = jnp.pad(text_c, ((0, 0), (0, Np - N), (0, Fin_p - Fin)))
    if Np != N:
        adj_c = jnp.pad(adj_c, ((0, 0), (0, Np - N), (0, Np - N)))
    if Fin_p != Fin or Fout_p != Fout:
        w_c = jnp.pad(w_c, ((0, Fin_p - Fin), (0, Fout_p - Fout)))

    if bias is None:
        bias_p = jnp.zeros((1, Fout_p), jnp.float32)
    else:
        bias_p = bias.reshape(1, Fout).astype(jnp.float32)
        if Fout_p != Fout:
            bias_p = jnp.pad(bias_p, ((0, 0), (0, Fout_p - Fout)))
    zero_bias_fin = jnp.zeros((1, Fin_p), jnp.float32)
    zero_bias_fout = jnp.zeros((1, Fout_p), jnp.float32)

    # ---- stage builders ------------------------------------------------------
    def run_matmul(x2d, w2d, b2d, out_dtype):
        Mq, Kp = x2d.shape
        Fp = w2d.shape[1]
        out_bytes = jnp.dtype(out_dtype).itemsize

        def fits(tm):
            need = (2 * tm * Kp * bytes_c          # x rows, double-buffered
                    + Kp * Fp * bytes_c            # resident weight (1 buffer)
                    + Fp * 4                       # resident bias
                    + 2 * tm * Fp * out_bytes)     # output, double-buffered
            return need <= int(vmem_limit * 0.8)

        TMH = _pick_tile(Mq, (2048, 1024, 512, 256, 128), fits)

        def make(single_buffer):
            resident = ({"pipeline_mode": pl.Buffered(1)} if single_buffer else {})
            return pl.pallas_call(
                _matmul_bias_kernel,
                out_shape=jax.ShapeDtypeStruct((Mq, Fp), out_dtype),
                grid_spec=pltpu.PrefetchScalarGridSpec(
                    num_scalar_prefetch=0,
                    grid=(Mq // TMH,),
                    in_specs=[
                        pl.BlockSpec((TMH, Kp), lambda i: (i, 0)),
                        pl.BlockSpec((Kp, Fp), lambda i: (0, 0), **resident),
                        pl.BlockSpec((1, Fp), lambda i: (0, 0), **resident),
                    ],
                    out_specs=pl.BlockSpec((TMH, Fp), lambda i: (i, 0)),
                ),
                compiler_params=pltpu.CompilerParams(
                    dimension_semantics=("parallel",),
                    vmem_limit_bytes=vmem_limit,
                ),
            )

        try:
            return make(True)(x2d, w2d, b2d)
        except Exception:  # pipeline_mode unsupported -> default double buffering
            return make(False)(x2d, w2d, b2d)

    def run_aggregate(adj3d, feat3d, b2d, out_dtype):
        Bq, Npq, Fp = feat3d.shape
        out_bytes = jnp.dtype(out_dtype).itemsize

        def fits(tm):
            need = (2 * tm * Npq * bytes_c         # adj rows, double-buffered
                    + Npq * Fp * bytes_c           # resident per-batch features
                    + Fp * 4                       # resident bias
                    + 2 * tm * Fp * out_bytes)     # output, double-buffered
            return need <= int(vmem_limit * 0.8)

        TM = _pick_tile(Npq, (512, 256, 128), fits)
        # TODO(synk): for graphs where the per-batch (Np, F) feature block alone
        # exceeds VMEM, add a K grid axis ("arbitrary", last) over adj columns
        # with f32 VMEM accumulators for agg and the row sums.

        kern = functools.partial(_aggregate_kernel, approx_recip=approx_recip)

        def make(single_buffer):
            resident = ({"pipeline_mode": pl.Buffered(1)} if single_buffer else {})
            return pl.pallas_call(
                kern,
                out_shape=jax.ShapeDtypeStruct((Bq, Npq, Fp), out_dtype),
                grid_spec=pltpu.PrefetchScalarGridSpec(
                    num_scalar_prefetch=0,
                    grid=(Bq, Npq // TM),
                    in_specs=[
                        pl.BlockSpec((None, TM, Npq), lambda b, i: (b, i, 0)),
                        pl.BlockSpec((None, Npq, Fp), lambda b, i: (b, 0, 0),
                                     **resident),
                        pl.BlockSpec((1, Fp), lambda b, i: (0, 0), **resident),
                    ],
                    out_specs=pl.BlockSpec((None, TM, Fp), lambda b, i: (b, i, 0)),
                ),
                compiler_params=pltpu.CompilerParams(
                    dimension_semantics=("parallel", "parallel"),
                    vmem_limit_bytes=vmem_limit,
                ),
            )

        try:
            return make(True)(adj3d, feat3d, b2d)
        except Exception:  # pipeline_mode unsupported -> default double buffering
            return make(False)(adj3d, feat3d, b2d)

    # ---- choose stage order by feature width --------------------------------
    if Fin_p <= Fout_p:
        # Exact reorder: ((adj @ text) / denom) @ W + bias
        agg = run_aggregate(adj_c, text_c, zero_bias_fin, compute_dtype)
        out_p = run_matmul(agg.reshape(M, Fin_p), w_c, bias_p, jnp.float32)
        out_p = out_p.reshape(B, Np, Fout_p)
    else:
        # Classic order: (adj @ (text @ W)) / denom + bias
        hidden = run_matmul(text_c.reshape(M, Fin_p), w_c, zero_bias_fout,
                            compute_dtype).reshape(B, Np, Fout_p)
        out_p = run_aggregate(adj_c, hidden, bias_p, jnp.float32)

    return out_p[:, :N, :Fout]


if __name__ == "__main__":
    # Small deterministic example: batch=2, nodes=16, in_features=32, out_features=32
    B, N, Fin, Fout = 2, 16, 32, 32
    key = jax.random.PRNGKey(0)
    k1, k2, k3, k4 = jax.random.split(key, 4)

    text = jax.random.normal(k1, (B, N, Fin), dtype=jnp.float32)
    adj = jax.random.uniform(k2, (B, N, N), dtype=jnp.float32)
    # Deterministic parameter init (synthetic; the PyTorch module leaves them uninit).
    weight = jax.random.normal(k3, (Fin, Fout), dtype=jnp.float32) * 0.1
    bias = jax.random.normal(k4, (Fout,), dtype=jnp.float32) * 0.1

    # Pure-JAX reference (same math as the PyTorch forward), full f32.
    hidden_ref = jnp.matmul(text, weight)
    denom_ref = jnp.sum(adj, axis=2, keepdims=True) + 1.0
    ref = jnp.matmul(adj, hidden_ref) / denom_ref + bias

    # Default path: bf16 streaming with f32 accumulation (looser tolerance).
    out_bf16 = graph_convolution(text, adj, weight, bias)
    jax.block_until_ready(out_bf16)
    assert out_bf16.shape == ref.shape
    assert jnp.allclose(out_bf16, ref, atol=5e-2, rtol=5e-2), "bf16 path mismatch vs reference"

    # Full-f32 path (exact division, no approx reciprocal).
    out_f32 = graph_convolution(text, adj, weight, bias, compute_dtype=jnp.float32)
    jax.block_until_ready(out_f32)
    assert jnp.allclose(out_f32, ref, atol=1e-3, rtol=1e-3), "f32 path mismatch vs reference"

    # Wide-output case exercises the (adj @ text) @ W reorder with Fin < Fout.
    Fout2 = 160
    w2 = jax.random.normal(k3, (Fin, Fout2), dtype=jnp.float32) * 0.1
    b2 = jax.random.normal(k4, (Fout2,), dtype=jnp.float32) * 0.1
    ref2 = jnp.matmul(adj, jnp.matmul(text, w2)) / denom_ref + b2
    out2 = graph_convolution(text, adj, w2, b2)
    jax.block_until_ready(out2)
    assert out2.shape == ref2.shape
    assert jnp.allclose(out2, ref2, atol=5e-2, rtol=5e-2), "wide-Fout path mismatch vs reference"

    print("KERNEL_OK")
</pallas_src>

<mosaic_0001>
module attributes {stable_mosaic.version = 11 : i64} {
  func.func @_aggregate_kernel(%arg0: i32, %arg1: i32, %arg2: memref<1x128x128xbf16, #tpu.memory_space<vmem>>, %arg3: memref<1x128x128xbf16, #tpu.memory_space<vmem>>, %arg4: memref<1x128xf32, #tpu.memory_space<vmem>>, %arg5: memref<1x128x128xbf16, #tpu.memory_space<vmem>>) attributes {dimension_semantics = [#tpu.dimension_semantics<parallel>, #tpu.dimension_semantics<parallel>], iteration_bounds = array<i64: 2, 1>, scalar_prefetch = 0 : i64, scratch_operands = 0 : i64, tpu.core_type = #tpu.core_type<tc>, window_params = [{transform_indices = @transform_0, window_bounds = array<i64: 1, 128, 128>}, {pipeline_mode = #tpu.pipeline_mode<synchronous>, transform_indices = @transform_1, window_bounds = array<i64: 1, 128, 128>}, {pipeline_mode = #tpu.pipeline_mode<synchronous>, transform_indices = @transform_2, window_bounds = array<i64: 1, 128>}, {transform_indices = @transform_3, window_bounds = array<i64: 1, 128, 128>}]} {
    %c0 = arith.constant 0 : index
    %c0_0 = arith.constant 0 : index
    %c0_1 = arith.constant 0 : index
    %0 = vector.load %arg2[%c0, %c0_0, %c0_1] : memref<1x128x128xbf16, #tpu.memory_space<vmem>>, vector<1x128x128xbf16>
    %1 = vector.shape_cast %0 : vector<1x128x128xbf16> to vector<128x128xbf16>
    %2 = arith.extf %1 : vector<128x128xbf16> to vector<128x128xf32>
    %cst = arith.constant dense<0.000000e+00> : vector<128xf32>
    %3 = vector.multi_reduction <add>, %2, %cst [1] : vector<128x128xf32> to vector<128xf32>
    %4 = vector.shape_cast %3 : vector<128xf32> to vector<128x1xf32>
    %cst_2 = arith.constant 1.000000e+00 : f32
    %5 = vector.broadcast %cst_2 : f32 to vector<128x1xf32>
    %6 = arith.addf %4, %5 : vector<128x1xf32>
    %c0_3 = arith.constant 0 : index
    %c0_4 = arith.constant 0 : index
    %c0_5 = arith.constant 0 : index
    %7 = vector.load %arg3[%c0_3, %c0_4, %c0_5] : memref<1x128x128xbf16, #tpu.memory_space<vmem>>, vector<1x128x128xbf16>
    %8 = vector.shape_cast %7 : vector<1x128x128xbf16> to vector<128x128xbf16>
    %cst_6 = arith.constant dense<0.000000e+00> : vector<128x128xf32>
    %9 = tpu.matmul %1, %8, %cst_6 {dimension_numbers = #tpu.dot_dimension_numbers<[1], [0], [0], [1], [0, 0, 1, 1], [], []>} : vector<128x128xbf16>, vector<128x128xbf16>, vector<128x128xf32> -> vector<128x128xf32>
    %10 = tpu.reciprocal %6 {approx = true} : vector<128x1xf32> -> vector<128x1xf32>
    %11 = vector.broadcast %10 : vector<128x1xf32> to vector<128x128xf32>
    %12 = arith.mulf %9, %11 : vector<128x128xf32>
    %c0_7 = arith.constant 0 : index
    %c0_8 = arith.constant 0 : index
    %13 = vector.load %arg4[%c0_7, %c0_8] : memref<1x128xf32, #tpu.memory_space<vmem>>, vector<1x128xf32>
    %14 = vector.broadcast %13 : vector<1x128xf32> to vector<128x128xf32>
    %15 = arith.addf %12, %14 : vector<128x128xf32>
    %16 = arith.truncf %15 : vector<128x128xf32> to vector<128x128xbf16>
    %c0_9 = arith.constant 0 : index
    %c0_10 = arith.constant 0 : index
    %c0_11 = arith.constant 0 : index
    %17 = vector.load %arg5[%c0_9, %c0_10, %c0_11] : memref<1x128x128xbf16, #tpu.memory_space<vmem>>, vector<1x128x128xbf16>
    %18 = vector.shape_cast %17 : vector<1x128x128xbf16> to vector<128x128xbf16>
    %19 = vector.shape_cast %16 : vector<128x128xbf16> to vector<1x128x128xbf16>
    tpu.vector_store %arg5[%c0_9, %c0_10, %c0_11], %19 {strides = array<i32>} : memref<1x128x128xbf16, #tpu.memory_space<vmem>>, vector<1x128x128xbf16>,
    return
  }
  func.func @transform_0(%arg0: i32, %arg1: i32) -> (i32, i32, i32) {
    %c0_i32 = arith.constant 0 : i32
    %c0_i32_0 = arith.constant 0 : i32
    return %arg0, %arg1, %c0_i32 : i32, i32, i32
  }
  func.func @transform_1(%arg0: i32, %arg1: i32) -> (i32, i32, i32) {
    %c0_i32 = arith.constant 0 : i32
    %c0_i32_0 = arith.constant 0 : i32
    %c0_i32_1 = arith.constant 0 : i32
    return %arg0, %c0_i32, %c0_i32_0 : i32, i32, i32
  }
  func.func @transform_2(%arg0: i32, %arg1: i32) -> (i32, i32) {
    %c0_i32 = arith.constant 0 : i32
    %c0_i32_0 = arith.constant 0 : i32
    %c0_i32_1 = arith.constant 0 : i32
    return %c0_i32, %c0_i32_0 : i32, i32
  }
  func.func @transform_3(%arg0: i32, %arg1: i32) -> (i32, i32, i32) {
    %c0_i32 = arith.constant 0 : i32
    %c0_i32_0 = arith.constant 0 : i32
    return %arg0, %arg1, %c0_i32 : i32, i32, i32
  }
}

module attributes {stable_mosaic.version = 11 : i64} {
  func.func @_aggregate_kernel(%arg0: i32, %arg1: i32, %arg2: memref<1x128x128xbf16, #tpu.memory_space<vmem>>, %arg3: memref<1x128x128xbf16, #tpu.memory_space<vmem>>, %arg4: memref<1x128xf32, #tpu.memory_space<vmem>>, %arg5: memref<1x128x128xbf16, #tpu.memory_space<vmem>>) attributes {dimension_semantics = [#tpu.dimension_semantics<parallel>, #tpu.dimension_semantics<parallel>], iteration_bounds = array<i64: 2, 1>, scalar_prefetch = 0 : i64, scratch_operands = 0 : i64, tpu.core_type = #tpu.core_type<tc>, window_params = [{transform_indices = @transform_0, window_bounds = array<i64: 1, 128, 128>}, {transform_indices = @transform_1, window_bounds = array<i64: 1, 128, 128>}, {pipeline_mode = #tpu.pipeline_mode<synchronous>, transform_indices = @transform_2, window_bounds = array<i64: 1, 128>}, {transform_indices = @transform_3, window_bounds = array<i64: 1, 128, 128>}]} {
    %c0 = arith.constant 0 : index
    %c0_0 = arith.constant 0 : index
    %c0_1 = arith.constant 0 : index
    %0 = vector.load %arg2[%c0, %c0_0, %c0_1] : memref<1x128x128xbf16, #tpu.memory_space<vmem>>, vector<1x128x128xbf16>
    %1 = vector.shape_cast %0 : vector<1x128x128xbf16> to vector<128x128xbf16>
    %2 = arith.extf %1 : vector<128x128xbf16> to vector<128x128xf32>
    %cst = arith.constant dense<0.000000e+00> : vector<128xf32>
    %3 = vector.multi_reduction <add>, %2, %cst [1] : vector<128x128xf32> to vector<128xf32>
    %4 = vector.shape_cast %3 : vector<128xf32> to vector<128x1xf32>
    %cst_2 = arith.constant 1.000000e+00 : f32
    %5 = vector.broadcast %cst_2 : f32 to vector<128x1xf32>
    %6 = arith.addf %4, %5 : vector<128x1xf32>
    %c0_3 = arith.constant 0 : index
    %c0_4 = arith.constant 0 : index
    %c0_5 = arith.constant 0 : index
    %7 = vector.load %arg3[%c0_3, %c0_4, %c0_5] : memref<1x128x128xbf16, #tpu.memory_space<vmem>>, vector<1x128x128xbf16>
    %8 = vector.shape_cast %7 : vector<1x128x128xbf16> to vector<128x128xbf16>
    %cst_6 = arith.constant dense<0.000000e+00> : vector<128x128xf32>
    %9 = tpu.matmul %1, %8, %cst_6 {dimension_numbers = #tpu.dot_dimension_numbers<[1], [0], [0], [1], [0, 0, 1, 1], [], []>} : vector<128x128xbf16>, vector<128x128xbf16>, vector<128x128xf32> -> vector<128x128xf32>
    %10 = tpu.reciprocal %6 {approx = true} : vector<128x1xf32> -> vector<128x1xf32>
    %11 = vector.broadcast %10 : vector<128x1xf32> to vector<128x128xf32>
    %12 = arith.mulf %9, %11 : vector<128x128xf32>
    %c0_7 = arith.constant 0 : index
    %c0_8 = arith.constant 0 : index
    %13 = vector.load %arg4[%c0_7, %c0_8] : memref<1x128xf32, #tpu.memory_space<vmem>>, vector<1x128xf32>
    %14 = vector.broadcast %13 : vector<1x128xf32> to vector<128x128xf32>
    %15 = arith.addf %12, %14 : vector<128x128xf32>
    %16 = arith.truncf %15 : vector<128x128xf32> to vector<128x128xbf16>
    %c0_9 = arith.constant 0 : index
    %c0_10 = arith.constant 0 : index
    %c0_11 = arith.constant 0 : index
    %17 = vector.load %arg5[%c0_9, %c0_10, %c0_11] : memref<1x128x128xbf16, #tpu.memory_space<vmem>>, vector<1x128x128xbf16>
    %18 = vector.shape_cast %17 : vector<1x128x128xbf16> to vector<128x128xbf16>
    %19 = vector.shape_cast %16 : vector<128x128xbf16> to vector<1x128x128xbf16>
    tpu.vector_store %arg5[%c0_9, %c0_10, %c0_11], %19 {strides = array<i32>} : memref<1x128x128xbf16, #tpu.memory_space<vmem>>, vector<1x128x128xbf16>,
    return
  }
  func.func @transform_0(%arg0: i32, %arg1: i32) -> (i32, i32, i32) {
    %c0_i32 = arith.constant 0 : i32
    %c0_i32_0 = arith.constant 0 : i32
    return %arg0, %arg1, %c0_i32 : i32, i32, i32
  }
  func.func @transform_1(%arg0: i32, %arg1: i32) -> (i32, i32, i32) {
    %c0_i32 = arith.constant 0 : i32
    %c0_i32_0 = arith.constant 0 : i32
    %c0_i32_1 = arith.constant 0 : i32
    return %arg0, %c0_i32, %c0_i32_0 : i32, i32, i32
  }
  func.func @transform_2(%arg0: i32, %arg1: i32) -> (i32, i32) {
    %c0_i32 = arith.constant 0 : i32
    %c0_i32_0 = arith.constant 0 : i32
    %c0_i32_1 = arith.constant 0 : i32
    return %c0_i32, %c0_i32_0 : i32, i32
  }
  func.func @transform_3(%arg0: i32, %arg1: i32) -> (i32, i32, i32) {
    %c0_i32 = arith.constant 0 : i32
    %c0_i32_0 = arith.constant 0 : i32
    return %arg0, %arg1, %c0_i32 : i32, i32, i32
  }
}

</mosaic_0001>

<bundles_post_ra>
// kernel: tpu_custom_call.1
= control target key start
LH: loop header
LB: loop body
LE: loop exit
PB: predicated region body
PF: predicated region fallthrough
CT: control target
= control target key end

     0   :  { %8 = vsyncpa [#allocation3], 0  ;;  %s1344_s0 = inlined_call_operand.hbm [shape: bf16[2,128,128], index: 0, kind: input, shape index: {}]   ;;  %s1345_s1 = inlined_call_operand.hbm [shape: bf16[2,128,128], index: 1, kind: input, shape index: {}]   ;;  %s1346_s2 = inlined_call_operand.vmem [shape: f32[1,128], index: 2, kind: input, shape index: {}]   ;;  %s1347_s3 = inlined_call_operand.hbm [shape: bf16[2,128,128], index: 3, kind: output, shape index: {}]  }
   0x1   :  { %10 = vsyncpa [#allocation3 + $0x1], 0 }
   0x2   :  { %11 = vsyncpa [#allocation6], 0 }
   0x3   :  { %12 = vsyncpa [#allocation4], 0 }
   0x4   :  { %14 = vsyncpa [#allocation4 + $0x1], 0  ;;  %s1128_s12 = smov 0   ;;  %s1130_s13 = smov 0  }
   0x5   :  { %s1132_s14 = smov 0   ;;  %s1134_s15 = smov 0  }
   0x6   :  { %s1136_s16 = smov 0   ;;  %s1138_s17 = smov 0  }
   0x7 LB: > { %s678_s18 = sadd.s32 4294967295, %s1101_s17   ;;  %s679_s19 = sadd.s32 4294967294, %s1101_s17   ;;  %s1101_s17 = sphi %s1138_s17, %s20_s17   ;;  %s1097_s16 = sphi %s1136_s16, %s1357_s16   ;;  %s1093_s15 = sphi %s1134_s15, %s1356_s15   ;;  %s1089_s14 = sphi %s1132_s14, %s1355_s14   ;;  %s1085_s13 = sphi %s1130_s13, %s1354_s13   ;;  %s1081_s12 = sphi %s1128_s12, %s1353_s12  }
   0x8   : > { %p54_p0 = scmp.ne.s32.totalorder %s1085_s13, %s1081_s12  ;;  %p55_p1 = scmp.eq.s32.totalorder %s678_s18, 0 }
   0x9   : > { %p133_p2 = scmp.eq.s32.totalorder %s679_s19, 1  ;;  %p680_p4 = scmp.ge.s32.totalorder %s1101_s17, 1 }
   0xa   : > { %p1164_p3 = por %p55_p1, %p54_p0  ;;  %p140_p6 = scmp.lt.s32.totalorder %s1101_s17, 3 }
   0xb   : > { %p1169_p5 = por %p133_p2, %p54_p0  ;;  %s759_s22 = sshll.u32 %s1093_s15, 6 }
   0xc   : > { %p1175_p7 = pnand %p680_p4, %p140_p6  ;;  %s153_s26 = scalar_lea.hbm %s1345_s1, %s759_s22 }
   0xd   : > { %s154_s27 = sshll.u32 %s153_s26, 4  ;;  %s1103_s28 = smov [#allocation5]   ;;  %s155_s27 = int_to_ptr.hbm [resolvable:$true] %s154_s27 }
   0xe   : > { %s156_s29 = sshll.u32 %s1103_s28, 4  ;;  %p855_p8 = pneg %p1175_p7  ;;  %s157_s29 = int_to_ptr.vmem [resolvable:$true] %s156_s29 }
   0xf   : > { %p683_p10 = scmp.ge.s32.totalorder %s1101_s17, 2  ;;  %s955_s4 = sshra.s32 %s155_s27, 4  ;;  %s956_s4 = int_to_ptr.hbm [resolvable:$true] %s955_s4 }
  0x10   : > { %p1188_p9 = pnand %p855_p8, %p1164_p3  ;;  %s957_s5 = scalar_lea.hbm %s956_s4, 64 }
  0x11   : > { %p958_p11 = scmp.ne.s32.totalorder %s956_s4, %s957_s5  ;;  %s962_s8 = scalar_lea.hbm %s1345_s1, 128 }
  0x12   : > { %p959_p12 = pneg %p1188_p9  ;;  %p963_p1 = scmp.lt.s32.totalorder %s956_s4, %s1345_s1 }
  0x13   : > { %p964_p2 = scmp.lt.s32.totalorder %s962_s8, %s957_s5 }
  0x14   : > { %p960_p13 = pnand %p959_p12, %p958_p11 }
  0x15   : > { %p965_p4 = por %p964_p2, %p963_p1 }
  0x16   : > { %p961_p0 = pneg %p960_p13 }
  0x18   : > { %p966_p6 = pnand %p965_p4, %p961_p0 }
  0x1a   : > { %969 = shalt.err (!%p966_p6)
}
  0x1b   : > { %s1104_s11 = smov 64   ;;  %s1105_s19 = smov 4  }
  0x1c   : > { %858 = dma.hbm_to_vmem [thread:$0]  (!%p1188_p9), %s155_s27, 1024, %s157_s29, [#allocation6], %s1104_s11, %s1104_s11, %s1105_s19  }
  0x1d   : > { %p127_p8 = scmp.eq.s32.totalorder %s678_s18, 1  ;;  %s32_s24 = sadd.s32 1, %s1097_s16 }
  0x1e   : > { %p34_p11 = scmp.ge.s32.totalorder %s32_s24, 2  ;;  %s41_s25 = sadd.s32 1, %s1089_s14 }
  0x1f   : > { %p48_p12 = scmp.ne.s32.totalorder %s1089_s14, %s1085_s13  ;;  %p49_p13 = scmp.eq.s32.totalorder %s1101_s17, 0 }
  0x20   : > { %s1359_s24 = smov (%p34_p11, %s32_s24), 0  ;;  %p867_p1 = scmp.lt.s32.totalorder %s1101_s17, 2 }
  0x21   : > { %p1215_p0 = por %p127_p8, %p48_p12  ;;  %s36_s28 = ssub.s32 %s1097_s16, %s1359_s24 }
  0x22   : > { %s173_s30 = sand.u32 1, %s1089_s14   ;;  %p39_p9 = scmp.eq.s32.totalorder %s36_s28, 0 }
  0x23   : > { %p50_p2 = por %p49_p13, %p48_p12  ;;  %s684_s27 = sshll.u32 %s173_s30, 6 }
  0x24   : > { %s760_s18 = sshll.u32 %s1097_s16, 6  ;;  %s177_s8 = scalar_lea.vmem [#allocation2], %s684_s27 }
  0x25   : > { %s1225_s29 = scalar_select %p39_p9, %s1089_s14, %s41_s25  }
  0x26   : > { %s184_s6 = scalar_lea.hbm %s1344_s0, %s760_s18  ;;  %s187_s9 = sshll.u32 %s177_s8, 4  ;;  %s188_s9 = int_to_ptr.vmem [resolvable:$true] %s187_s9 }
  0x27   : > { %s185_s7 = sshll.u32 %s184_s6, 4  ;;  %p860_p4 = pnand %p867_p1, %p50_p2  ;;  %s186_s7 = int_to_ptr.hbm [resolvable:$true] %s185_s7 }
  0x28   : > { %s174_s10 = scalar_lea.sflag [#allocation3], %s173_s30  ;;  %199 = sbr.rel (%p1175_p7) target bundleno = 248 (0xf8), region = 32 }
  0x29   : > { %862 = dma.hbm_to_vmem [thread:$0]  (!%p860_p4), %s186_s7, 1024, %s188_s9, %s174_s10, %s1104_s11, %s1104_s11, %s1105_s19  }
  0x2a   : > { %s1238_s25 = sand.u32 (!%p1175_p7), 1, %s1085_s13  }
  0x2b   : > { %s688_s28 = sshll.u32 (!%p1175_p7), %s1238_s25, 6  ;;  %s202_s27 = scalar_lea.sflag (!%p1175_p7), [#allocation3], %s1238_s25 }
  0x2c   : > { %s1244_s18 = scalar_lea.vmem (!%p1175_p7), [#allocation2], %s688_s28 }
  0x2d   : > { %1068 = dma.done.wait (%p1164_p3), %s202_s27, 1024  }
  0x2e   : > { %1070 = vsyncadd (%p1164_p3), %s202_s27, 4294966272 }
  0x2f   : > { %1072 = dma.done.wait (%p1164_p3), [#allocation6], 1024  }
  0x30   : > { %1074 = vsyncadd (%p1164_p3), [#allocation6], 4294966272  ;;  %v776_v0 = vld [vmem:[#allocation5 + $0x38] sm:$0xff]  ;;  %v236_v1 = vld [vmem:[%s1244_s18] sm:$0xff]   ;;  %s1282_s11 = scalar_lea.vmem [#allocation7], %s688_s28  ;;  %s575_s4 = scalar_lea.hbm %s1347_s3, %s759_s22 }
  0x31   : > { %v252_v2 = vunpack.c.l.bf16 %v236_v1  ;;  %v238_v3 = vld [vmem:[%s1244_s18 + $0x8] sm:$0xff]   ;;  %428 = vmatpush.bf16.msra.mxu0 %v776_v0  ;;  %825 = vmatpush.bf16.msra.mxu1 %v776_v0  ;;  %v775_v4 = vld [vmem:[#allocation5 + $0x30] sm:$0xff]  ;;  %v253_v9 = vunpack.c.h.bf16 %v236_v1  ;;  %v773_v12 = vld [vmem:[#allocation5 + $0x20] sm:$0xff]  ;;  %s576_s5 = sshll.u32 %s1282_s11, 4  ;;  %s578_s6 = sshll.u32 %s575_s4, 4  ;;  %s577_s5 = int_to_ptr.vmem [resolvable:$true] %s576_s5  ;;  %s579_s6 = int_to_ptr.hbm [resolvable:$true] %s578_s6 }
  0x32   : > { %v254_v5 = vunpack.c.l.bf16 %v238_v3  ;;  %v240_v6 = vld [vmem:[%s1244_s18 + $0x10] sm:$0xff]   ;;  %826 = vmatpush.bf16.msra.mxu2 %v776_v0  ;;  %827 = vmatpush.bf16.msra.mxu3 %v776_v0  ;;  %v774_v8 = vld [vmem:[#allocation5 + $0x28] sm:$0xff]  ;;  %v255_v10 = vunpack.c.h.bf16 %v238_v3  ;;  %v242_v13 = vld [vmem:[%s1244_s18 + $0x18] sm:$0xff]   ;;  %s562_s15 = scalar_lea.sflag [#allocation4], %s1238_s25  ;;  %s1029_s22 = sshra.s32 %s579_s6, 4  ;;  %s1030_s22 = int_to_ptr.hbm [resolvable:$true] %s1029_s22 }
  0x33   : > { %v256_v7 = vunpack.c.l.bf16 %v240_v6  ;;  %268 = vadd.xlane.f32.xlu0 %v252_v2  ;;  %v257_v11 = vunpack.c.h.bf16 %v240_v6  ;;  %v772_v14 = vld [vmem:[#allocation5 + $0x18] sm:$0xff]  ;;  %v244_v15 = vld [vmem:[%s1244_s18 + $0x20] sm:$0xf]  ;;  %v258_v16 = vunpack.c.l.bf16 %v242_v13  ;;  %v259_v17 = vunpack.c.h.bf16 %v242_v13  ;;  %v771_v19 = vld [vmem:[#allocation5 + $0x10] sm:$0xff]  ;;  %s1031_s7 = scalar_lea.hbm %s1030_s22, 64  ;;  %s1035_s10 = scalar_lea.hbm %s1347_s3, 128 }
  0x34   : > { %272 = vadd.xlane.f32.xlu1 %v254_v5  ;;  %v260_v18 = vunpack.c.l.bf16 %v244_v15  ;;  %v245_v20 = vld [vmem:[%s1244_s18 + $0x24] sm:$0xff]   ;;  %v247_v22 = vld [vmem:[%s1244_s18 + $0x2c] sm:$0xf]  ;;  %v763_v28 = vld [vmem:[%s1244_s18 + $0x10] sm:$0xff]  ;;  %p1032_p3 = scmp.ne.s32.totalorder %s1030_s22, %s1031_s7  ;;  %p1036_p8 = scmp.lt.s32.totalorder %s1030_s22, %s1347_s3 }
  0x35   : > { %276 = vadd.xlane.f32.xlu2 %v256_v7  ;;  %429 = vmatpush.bf16.msra.mxu0 %v775_v4  ;;  %v770_v21 = vld [vmem:[#allocation5 + $0x8] sm:$0xff]  ;;  %v261_v23 = vunpack.c.l.bf16 %v245_v20  ;;  %v262_v24 = vunpack.c.h.bf16 %v245_v20  ;;  %v263_v25 = vunpack.c.l.bf16 %v247_v22  ;;  %v769_v26 = vld [vmem:[#allocation5] sm:$0xff]  ;;  %v248_v29 = vld [vmem:[%s1244_s18 + $0x30] sm:$0xff]   ;;  %p1037_p11 = scmp.lt.s32.totalorder %s1035_s10, %s1031_s7 }
  0x36   : > { %828 = vmatpush.bf16.msra.mxu1 %v775_v4  ;;  %829 = vmatpush.bf16.msra.mxu2 %v775_v4  ;;  %v761_v27 = vld [vmem:[%s1244_s18] sm:$0xff]  ;;  %v767_v31 = vld [vmem:[%s1244_s18 + $0x30] sm:$0xff]  ;;  %v250_v32 = vld [vmem:[%s1244_s18 + $0x38] sm:$0xff]   ;;  %v264_v33 = vunpack.c.l.bf16 %v248_v29  ;;  %v265_v34 = vunpack.c.h.bf16 %v248_v29  ;;  %p1033_p7 = pnand %p1032_p3, %p1215_p0 }
  0x37   : > { %830 = vmatpush.bf16.msra.mxu3 %v775_v4  ;;  %v765_v30 = vld [vmem:[%s1244_s18 + $0x20] sm:$0xff]  ;;  %v266_v35 = vunpack.c.l.bf16 %v250_v32  ;;  %v267_v36 = vunpack.c.h.bf16 %v250_v32  ;;  %v762_v37 = vld [vmem:[%s1244_s18 + $0x8] sm:$0xff]  ;;  %v764_v38 = vld [vmem:[%s1244_s18 + $0x18] sm:$0xff]  ;;  %p1038_p12 = por %p1037_p11, %p1036_p8 }
  0x38   : > { %v766_v39 = vld [vmem:[%s1244_s18 + $0x28] sm:$0xff]  ;;  %v768_v40 = vld [vmem:[%s1244_s18 + $0x38] sm:$0xff]  ;;  %v1274_v5 = vld [vmem:[%s1346_s2] ss:$0 sm:$0xff]  ;;  %p1034_p6 = pneg %p1033_p7 }
  0x39   : > { %430 = vmatpush.bf16.msra.mxu0 %v774_v8 }
  0x3a   : > { %831 = vmatpush.bf16.msra.mxu1 %v774_v8  ;;  %832 = vmatpush.bf16.msra.mxu2 %v774_v8  ;;  %p1039_p13 = pnand %p1038_p12, %p1034_p6 }
  0x3b   : > { %833 = vmatpush.bf16.msra.mxu3 %v774_v8  ;;  %270 = vadd.xlane.f32.xlu0 %v253_v9 }
  0x3c   : > { %274 = vadd.xlane.f32.xlu1 %v255_v10 }
  0x3d   : > { %278 = vadd.xlane.f32.xlu2 %v257_v11  ;;  %431 = vmatpush.bf16.msra.mxu0 %v773_v12 }
  0x3e   : > { %834 = vmatpush.bf16.msra.mxu1 %v773_v12  ;;  %835 = vmatpush.bf16.msra.mxu2 %v773_v12 }
  0x3f   : > { %836 = vmatpush.bf16.msra.mxu3 %v773_v12 }
  0x41   : > { %432 = vmatpush.bf16.msra.mxu0 %v772_v14 }
  0x42   : > { %837 = vmatpush.bf16.msra.mxu1 %v772_v14  ;;  %838 = vmatpush.bf16.msra.mxu2 %v772_v14 }
  0x43   : > { %839 = vmatpush.bf16.msra.mxu3 %v772_v14  ;;  %280 = vadd.xlane.f32.xlu0 %v258_v16 }
  0x44   : > { %282 = vadd.xlane.f32.xlu1 %v259_v17 }
  0x45   : > { %284 = vadd.xlane.f32.xlu2 %v260_v18  ;;  %433 = vmatpush.bf16.msra.mxu0 %v771_v19 }
  0x46   : > { %840 = vmatpush.bf16.msra.mxu1 %v771_v19  ;;  %841 = vmatpush.bf16.msra.mxu2 %v771_v19 }
  0x47   : > { %842 = vmatpush.bf16.msra.mxu3 %v771_v19 }
  0x49   : > { %434 = vmatpush.bf16.msra.mxu0 %v770_v21 }
  0x4a   : > { %843 = vmatpush.bf16.msra.mxu1 %v770_v21  ;;  %844 = vmatpush.bf16.msra.mxu2 %v770_v21 }
  0x4b   : > { %845 = vmatpush.bf16.msra.mxu3 %v770_v21  ;;  %286 = vadd.xlane.f32.xlu0 %v261_v23 }
  0x4c   : > { %288 = vadd.xlane.f32.xlu1 %v262_v24 }
  0x4d   : > { %290 = vadd.xlane.f32.xlu2 %v263_v25  ;;  %435 = vmatpush.bf16.msra.mxu0 %v769_v26 }
  0x4e   : > { %846 = vmatpush.bf16.msra.mxu1 %v769_v26  ;;  %847 = vmatpush.bf16.msra.mxu2 %v769_v26 }
  0x4f   : > { %848 = vmatpush.bf16.msra.mxu3 %v769_v26 }
  0x50   : > { %436 = vmatmul.bf16.vlgmr.msra.gmra.mxu0 %v761_v27 }
  0x51   : > { %446 = vmatmul.bf16.vlgmr.msra.gmra.mxu1 %v763_v28  ;;  %456 = vmatmul.bf16.vlgmr.msra.gmra.mxu2 %v765_v30 }
  0x52   : > { %466 = vmatmul.bf16.vlgmr.msra.gmra.mxu3 %v767_v31 }
  0x53   : > { %292 = vadd.xlane.f32.xlu0 %v264_v33 }
  0x54   : > { %294 = vadd.xlane.f32.xlu1 %v265_v34 }
  0x55   : > { %296 = vadd.xlane.f32.xlu2 %v266_v35 }
  0x5b   : > { %298 = vadd.xlane.f32.xlu0 %v267_v36 }
  0x60   : > { %441 = vmatmul.bf16.gmra.mxu0 %v762_v37 }
  0x61   : > { %451 = vmatmul.bf16.gmra.mxu1 %v764_v38  ;;  %461 = vmatmul.bf16.gmra.mxu2 %v766_v39 }
  0x62   : > { %471 = vmatmul.bf16.gmra.mxu3 %v768_v40 }
  0xa6   : > { %v269_v41 = vpop.xlane.xlu0 %268 }
  0xa7   : > { %v273_v42 = vpop.xlane.xlu1 %272  ;;  %v300_v52 = vadd.f32 1.0, %v269_v41 }
  0xa8   : > { %v277_v45 = vpop.xlane.xlu2 %276  ;;  %v302_v15 = vadd.f32 1.0, %v273_v42 }
  0xa9   : > { %v304_v53 = vadd.f32 1.0, %v277_v45  ;;  %923 = vrcp.f32 %v300_v52 }
  0xab   : > { %925 = vrcp.f32 %v304_v53 }
  0xae   : > { %v271_v43 = vpop.xlane.xlu0 %270 }
  0xaf   : > { %v275_v44 = vpop.xlane.xlu1 %274  ;;  %v301_v54 = vadd.f32 1.0, %v271_v43  ;;  %v924_v1 = vpop.eup %923 }
  0xb0   : > { %v279_v48 = vpop.xlane.xlu2 %278  ;;  %v303_v16 = vadd.f32 1.0, %v275_v44 }
  0xb1   : > { %v305_v55 = vadd.f32 1.0, %v279_v48  ;;  %927 = vrcp.f32 %v301_v54  ;;  %v926_v2 = vpop.eup %925 }
  0xb3   : > { %929 = vrcp.f32 %v305_v55 }
  0xb6   : > { %v281_v46 = vpop.xlane.xlu0 %280 }
  0xb7   : > { %v283_v47 = vpop.xlane.xlu1 %282  ;;  %v928_v3 = vpop.eup %927  ;;  %v306_v23 = vadd.f32 1.0, %v281_v46 }
  0xb8   : > { %v285_v51 = vpop.xlane.xlu2 %284  ;;  %v307_v25 = vadd.f32 1.0, %v283_v47 }
  0xb9   : > { %v308_v58 = vadd.f32 1.0, %v285_v51  ;;  %v930_v9 = vpop.eup %929 }
  0xbb   : > { %931 = vrcp.f32 %v308_v58 }
  0xbe   : > { %v287_v49 = vpop.xlane.xlu0 %286 }
  0xbf   : > { %v289_v50 = vpop.xlane.xlu1 %288  ;;  %v309_v62 = vadd.f32 1.0, %v287_v49 }
  0xc0   : > { %v291_v0 = vpop.xlane.xlu2 %290  ;;  %v310_v34 = vadd.f32 1.0, %v289_v50 }
  0xc1   : > { %v932_v14 = vpop.eup %931  ;;  %v311_v49 = vadd.f32 1.0, %v291_v0 }
  0xc6   : > { %v293_v56 = vpop.xlane.xlu0 %292 }
  0xc7   : > { %v295_v57 = vpop.xlane.xlu1 %294  ;;  %v312_v61 = vadd.f32 1.0, %v293_v56 }
  0xc8   : > { %v313_v63 = vadd.f32 1.0, %v295_v57  ;;  %v297_v30 = vpop.xlane.xlu2 %296 }
  0xc9   : > { %933 = vrcp.f32 %v312_v61  ;;  %v314_v39 = vadd.f32 1.0, %v297_v30 }
  0xca   : > { %935 = vrcp.f32 %v309_v62 }
  0xcb   : > { %937 = vrcp.f32 %v313_v63 }
  0xcc   : > { %939 = vrcp.f32 %v302_v15 }
  0xcd   : > { %v437_v59 = vpop.f32.mrf.mxu0  ;;  %941 = vrcp.f32 %v303_v16 }
  0xce   : > { %v447_v60 = vpop.f32.mrf.mxu1  ;;  %v493_v4 = vmul.f32 %v924_v1, %v437_v59  ;;  %v299_v31 = vpop.xlane.xlu0 %298  ;;  %943 = vrcp.f32 %v306_v23 }
  0xcf   : > { %v497_v6 = vmul.f32 %v926_v2, %v447_v60  ;;  %v934_v17 = vpop.eup %933  ;;  %945 = vrcp.f32 %v307_v25  ;;  %v315_v44 = vadd.f32 1.0, %v299_v31 }
  0xd0   : > { %v513_v18 = vadd.f32 %v1274_v5, %v493_v4  ;;  %v936_v22 = vpop.eup %935  ;;  %947 = vrcp.f32 %v310_v34 }
  0xd1   : > { %v517_v19 = vadd.f32 %v1274_v5, %v497_v6  ;;  %v938_v24 = vpop.eup %937  ;;  %949 = vrcp.f32 %v314_v39 }
  0xd2   : > { %v940_v45 = vpop.eup %939  ;;  %951 = vrcp.f32 %v315_v44 }
  0xd3   : > { %v942_v48 = vpop.eup %941  ;;  %953 = vrcp.f32 %v311_v49 }
  0xd4   : > { %v457_v7 = vpop.f32.mrf.mxu2  ;;  %v944_v50 = vpop.eup %943 }
  0xd5   : > { %v467_v8 = vpop.f32.mrf.mxu3  ;;  %v439_v10 = vpop.f32.mrf.mxu0  ;;  %v501_v28 = vmul.f32 %v932_v14, %v457_v7 }
  0xd6   : > { %v449_v11 = vpop.f32.mrf.mxu1  ;;  %v494_v12 = vmul.f32 %v928_v3, %v439_v10  ;;  %v505_v29 = vmul.f32 %v934_v17, %v467_v8  ;;  %v946_v51 = vpop.eup %945 }
  0xd7   : > { %v498_v13 = vmul.f32 %v930_v9, %v449_v11  ;;  %v521_v40 = vadd.f32 %v1274_v5, %v501_v28  ;;  %v948_v60 = vpop.eup %947 }
  0xd8   : > { %v514_v20 = vadd.f32 %v1274_v5, %v494_v12  ;;  %v525_v41 = vadd.f32 %v1274_v5, %v505_v29  ;;  %v950_v61 = vpop.eup %949 }
  0xd9   : > { %v518_v21 = vadd.f32 %v1274_v5, %v498_v13  ;;  %v952_v2 = vpop.eup %951 }
  0xda   : > { %v781_v26 = vpack.c.bf16 %v514_v20, %v513_v18  ;;  %v954_v8 = vpop.eup %953 }
  0xdb   : > { %v791_v27 = vpack.c.bf16 %v518_v21, %v517_v19 }
  0xdc   : > { %782 = vst [vmem:[%s1282_s11] sm:$0xff] %v781_v26   ;;  %v459_v32 = vpop.f32.mrf.mxu2 }
  0xdd   : > { %v469_v33 = vpop.f32.mrf.mxu3  ;;  %819 = vst [vmem:[%s1282_s11 + $0x10] sm:$0xff] %v791_v27   ;;  %v502_v35 = vmul.f32 %v936_v22, %v459_v32  ;;  %v442_v37 = vpop.f32.mrf.mxu0 }
  0xde   : > { %v506_v36 = vmul.f32 %v938_v24, %v469_v33  ;;  %v452_v38 = vpop.f32.mrf.mxu1  ;;  %v495_v52 = vmul.f32 %v940_v45, %v442_v37 }
  0xdf   : > { %v522_v42 = vadd.f32 %v1274_v5, %v502_v35  ;;  %v499_v53 = vmul.f32 %v944_v50, %v452_v38 }
  0xe0   : > { %v526_v43 = vadd.f32 %v1274_v5, %v506_v36  ;;  %v515_v62 = vadd.f32 %v1274_v5, %v495_v52 }
  0xe1   : > { %v801_v46 = vpack.c.bf16 %v522_v42, %v521_v40  ;;  %v519_v63 = vadd.f32 %v1274_v5, %v499_v53 }
  0xe2   : > { %v811_v47 = vpack.c.bf16 %v526_v43, %v525_v41 }
  0xe3   : > { %821 = vst [vmem:[%s1282_s11 + $0x20] sm:$0xff] %v801_v46  }
  0xe4   : > { %823 = vst [vmem:[%s1282_s11 + $0x30] sm:$0xff] %v811_v47   ;;  %v462_v54 = vpop.f32.mrf.mxu2 }
  0xe5   : > { %v472_v55 = vpop.f32.mrf.mxu3  ;;  %v444_v56 = vpop.f32.mrf.mxu0  ;;  %v503_v6 = vmul.f32 %v948_v60, %v462_v54 }
  0xe6   : > { %v454_v57 = vpop.f32.mrf.mxu1  ;;  %v496_v58 = vmul.f32 %v942_v48, %v444_v56  ;;  %v507_v7 = vmul.f32 %v950_v61, %v472_v55 }
  0xe7   : > { %v500_v59 = vmul.f32 %v946_v51, %v454_v57  ;;  %v523_v13 = vadd.f32 %v1274_v5, %v503_v6 }
  0xe8   : > { %v516_v0 = vadd.f32 %v1274_v5, %v496_v58  ;;  %v527_v14 = vadd.f32 %v1274_v5, %v507_v7 }
  0xe9   : > { %v520_v1 = vadd.f32 %v1274_v5, %v500_v59 }
  0xea   : > { %v786_v3 = vpack.c.bf16 %v516_v0, %v515_v62 }
  0xeb   : > { %v796_v4 = vpack.c.bf16 %v520_v1, %v519_v63 }
  0xec   : > { %818 = vst [vmem:[%s1282_s11 + $0x8] sm:$0xff] %v786_v3   ;;  %v464_v9 = vpop.f32.mrf.mxu2 }
  0xed   : > { %v474_v10 = vpop.f32.mrf.mxu3  ;;  %820 = vst [vmem:[%s1282_s11 + $0x18] sm:$0xff] %v796_v4   ;;  %v504_v11 = vmul.f32 %v954_v8, %v464_v9 }
  0xee   : > { %v508_v12 = vmul.f32 %v952_v2, %v474_v10 }
  0xef   : > { %v524_v15 = vadd.f32 %v1274_v5, %v504_v11 }
  0xf0   : > { %v528_v16 = vadd.f32 %v1274_v5, %v508_v12 }
  0xf1   : > { %v806_v17 = vpack.c.bf16 %v524_v15, %v523_v13 }
  0xf2   : > { %v816_v18 = vpack.c.bf16 %v528_v16, %v527_v14 }
  0xf3   : > { %822 = vst [vmem:[%s1282_s11 + $0x28] sm:$0xff] %v806_v17  }
  0xf4   : > { %824 = vst [vmem:[%s1282_s11 + $0x38] sm:$0xff] %v816_v18  }
  0xf5   : > { %1042 = shalt.err (!%p1039_p13)
}
  0xf6   : > { %s1106_s25 = smov 64   ;;  %s1107_s18 = smov 4  }
  0xf7   : > { %853 = dma.vmem_to_hbm [thread:$0]  (%p1215_p0), %s577_s5, 1024, %s579_s6, %s562_s15, %s1106_s25, %s1106_s25, %s1107_s18  }
  0xf8 PF: > { %s593_s20 = sand.u32 1, %s1081_s12   ;;  %p864_p1 = pnand %p683_p10, %p1169_p5 }
  0xf9   : > { %s594_s23 = scalar_lea.sflag [#allocation4], %s593_s20 }
  0xfa   : > { %p865_p9 = pneg %p864_p1 }
  0xfc   : > { %1076 = dma.done.wait (%p865_p9), %s594_s23, 1024  }
  0xfd   : > { %1078 = vsyncadd (%p865_p9), %s594_s23, 4294966272  ;;  %s20_s17 = sadd.s32 1, %s1101_s17   ;;  %s1353_s12 = smov %s1085_s13 }
  0xfe   : > { %p17_p2 = scmp.ge.s32.totalorder %s20_s17, 4   ;;  %s1354_s13 = smov %s1089_s14 }
  0xff   : > { %s1355_s14 = smov %s1225_s29  ;;  %s1356_s15 = smov %s1097_s16 }
 0x100   : > { %s1357_s16 = smov %s1359_s24  ;;  %19 = sbr.rel (!%p17_p2) target bundleno = 7 (0x7), region = 82 }
 0x105   :  { %600 = vsyncpa [#allocation3], 1 }
 0x106   :  { %602 = vsyncpa [#allocation3 + $0x1], 1 }
 0x107   :  { %603 = vsyncpa [#allocation6], 1 }
 0x108   :  { %604 = vsyncpa [#allocation4], 1 }
 0x109   :  { %606 = vsyncpa [#allocation4 + $0x1], 1 }

// kernel: tpu_custom_call.1
= control target key start
LH: loop header
LB: loop body
LE: loop exit
PB: predicated region body
PF: predicated region fallthrough
CT: control target
= control target key end

     0   :  { %s1362_s0 = inlined_call_operand.hbm [shape: bf16[2,128,128], index: 0, kind: input, shape index: {}]   ;;  %s1363_s1 = inlined_call_operand.hbm [shape: bf16[2,128,128], index: 1, kind: input, shape index: {}]   ;;  %s1364_s2 = inlined_call_operand.vmem [shape: f32[1,128], index: 2, kind: input, shape index: {}]   ;;  %s1365_s3 = inlined_call_operand.hbm [shape: bf16[2,128,128], index: 3, kind: output, shape index: {}]  }
   0x1   :  { %1366 = sst [smem:[#allocation11_spill]] %s1362_s0 }
   0x2   :  { %8 = vsyncpa [#allocation3], 0 }
   0x3   :  { %10 = vsyncpa [#allocation3 + $0x1], 0 }
   0x4   :  { %11 = vsyncpa [#allocation6], 0 }
   0x5   :  { %13 = vsyncpa [#allocation6 + $0x1], 0 }
   0x6   :  { %14 = vsyncpa [#allocation4], 0 }
   0x7   :  { %16 = vsyncpa [#allocation4 + $0x1], 0  ;;  %s1155_s12 = smov 0   ;;  %s1157_s13 = smov 0  }
   0x8   :  { %s1159_s14 = smov 0   ;;  %s1161_s15 = smov 0  }
   0x9   :  { %s1163_s16 = smov 0   ;;  %s1165_s17 = smov 0  }
   0xa LB: > { %s706_s18 = sadd.s32 4294967295, %s1129_s17   ;;  %s707_s19 = sadd.s32 4294967294, %s1129_s17   ;;  %s1129_s17 = sphi %s1165_s17, %s22_s17   ;;  %s1125_s16 = sphi %s1163_s16, %s1377_s16   ;;  %s1121_s15 = sphi %s1161_s15, %s1376_s15   ;;  %s1117_s14 = sphi %s1159_s14, %s1375_s14   ;;  %s1113_s13 = sphi %s1157_s13, %s1374_s13   ;;  %s1109_s12 = sphi %s1155_s12, %s1373_s12  }
   0xb   : > { %s34_s20 = sadd.s32 1, %s1125_s16  ;;  %s43_s21 = sadd.s32 1, %s1117_s14 }
   0xc   : > { %p36_p0 = scmp.ge.s32.totalorder %s34_s20, 2  ;;  %p50_p1 = scmp.ne.s32.totalorder %s1117_s14, %s1113_s13 }
   0xd   : > { %p51_p2 = scmp.eq.s32.totalorder %s1129_s17, 0  ;;  %p56_p3 = scmp.ne.s32.totalorder %s1113_s13, %s1109_s12 }
   0xe   : > { %s1379_s20 = smov (%p36_p0, %s34_s20), 0  ;;  %p57_p5 = scmp.eq.s32.totalorder %s706_s18, 0 }
   0xf   : > { %p1196_p4 = por %p51_p2, %p50_p1  ;;  %s38_s23 = ssub.s32 %s1125_s16, %s1379_s20 }
  0x10   : > { %p129_p6 = scmp.eq.s32.totalorder %s706_s18, 1  ;;  %p41_p7 = scmp.eq.s32.totalorder %s38_s23, 0 }
  0x11   : > { %p1202_p8 = por %p57_p5, %p56_p3  ;;  %p135_p10 = scmp.eq.s32.totalorder %s707_s19, 1 }
  0x12   : > { %p1206_p9 = por %p129_p6, %p50_p1  ;;  %p709_p12 = scmp.ge.s32.totalorder %s1129_s17, 2 }
  0x13   : > { %s1211_s26 = scalar_select %p41_p7, %s1117_s14, %s43_s21  }
  0x14   : > { %p1213_p11 = por %p135_p10, %p56_p3  ;;  %p896_p13 = scmp.lt.s32.totalorder %s1129_s17, 2 }
  0x15   : > { %s1220_s28 = sand.u32 1, %s1117_s14   ;;  %s789_s30 = sshll.u32 %s1125_s16, 6 }
  0x16   : > { %s710_s29 = sshll.u32 %s1220_s28, 6  ;;  %s1371_s0 = sld [smem:[#allocation11_spill]] }
  0x17   : > { %s162_s7 = scalar_lea.vmem [#allocation2], %s710_s29  ;;  %p1229_p0 = pnand %p896_p13, %p1196_p4 }
  0x18   : > { %s172_s8 = sshll.u32 %s162_s7, 4  ;;  %p716_p1 = scmp.ge.s32.totalorder %s1129_s17, 1  ;;  %s173_s8 = int_to_ptr.vmem [resolvable:$true] %s172_s8 }
  0x19   : > { %s159_s11 = scalar_lea.sflag [#allocation3], %s1220_s28  ;;  %s1131_s18 = smov 64  }
  0x1a   : > { %s1132_s19 = smov 4   ;;  %p202_p2 = scmp.lt.s32.totalorder %s1129_s17, 3 }
  0x1b   : > { %s191_s4 = scalar_lea.hbm %s1363_s1, %s789_s30  ;;  %s186_s22 = scalar_lea.vmem [#allocation5], %s710_s29 }
  0x1c   : > { %s169_s6 = scalar_lea.hbm %s1371_s0, %s789_s30  ;;  %p203_p3 = pnand %p716_p1, %p202_p2 }
  0x1d   : > { %s170_s9 = sshll.u32 %s169_s6, 4  ;;  %s192_s5 = sshll.u32 %s191_s4, 4  ;;  %s171_s9 = int_to_ptr.hbm [resolvable:$true] %s170_s9  ;;  %s193_s5 = int_to_ptr.hbm [resolvable:$true] %s192_s5 }
  0x1e   : > { %888 = dma.hbm_to_vmem [thread:$0]  (!%p1229_p0), %s171_s9, 1024, %s173_s8, %s159_s11, %s1131_s18, %s1131_s18, %s1132_s19  }
  0x1f   : > { %s194_s6 = sshll.u32 %s186_s22, 4  ;;  %s183_s7 = scalar_lea.sflag [#allocation6], %s1220_s28  ;;  %s195_s6 = int_to_ptr.vmem [resolvable:$true] %s194_s6 }
  0x20   : > { %891 = dma.hbm_to_vmem [thread:$0]  (!%p1229_p0), %s193_s5, 1024, %s195_s6, %s183_s7, %s1131_s18, %s1131_s18, %s1132_s19  }
  0x21   : > { %206 = sbr.rel (%p203_p3) target bundleno = 241 (0xf1), region = 32  ;;  %s1245_s0 = sand.u32 (!%p203_p3), 1, %s1113_s13  }
  0x22   : > { %s1248_s8 = sshll.u32 (!%p203_p3), %s1245_s0, 6  ;;  %s209_s30 = scalar_lea.sflag (!%p203_p3), [#allocation3], %s1245_s0 }
  0x23   : > { %s1252_s9 = scalar_lea.vmem (!%p203_p3), [#allocation2], %s1248_s8 }
  0x26   : > { %1096 = dma.done.wait (%p1202_p8), %s209_s30, 1024  }
  0x27   : > { %1098 = vsyncadd (%p1202_p8), %s209_s30, 4294966272  ;;  %s219_s28 = scalar_lea.sflag [#allocation6], %s1245_s0  ;;  %s1260_s29 = scalar_lea.vmem [#allocation5], %s1248_s8 }
  0x28   : > { %1100 = dma.done.wait (%p1202_p8), %s219_s28, 1024  }
  0x29   : > { %1102 = vsyncadd (%p1202_p8), %s219_s28, 4294966272  ;;  %v806_v0 = vld [vmem:[%s1260_s29 + $0x38] sm:$0xff]  ;;  %v253_v1 = vld [vmem:[%s1252_s9] sm:$0xff]   ;;  %s1301_s11 = scalar_lea.vmem [#allocation7], %s1248_s8  ;;  %s807_s18 = sshll.u32 %s1121_s15, 6 }
  0x2a   : > { %v269_v2 = vunpack.c.l.bf16 %v253_v1  ;;  %v255_v3 = vld [vmem:[%s1252_s9 + $0x8] sm:$0xff]   ;;  %445 = vmatpush.bf16.msra.mxu0 %v806_v0  ;;  %855 = vmatpush.bf16.msra.mxu1 %v806_v0  ;;  %v805_v4 = vld [vmem:[%s1260_s29 + $0x30] sm:$0xff]  ;;  %v270_v9 = vunpack.c.h.bf16 %v253_v1  ;;  %v803_v12 = vld [vmem:[%s1260_s29 + $0x20] sm:$0xff]  ;;  %s592_s23 = scalar_lea.hbm %s1365_s3, %s807_s18  ;;  %s593_s15 = sshll.u32 %s1301_s11, 4  ;;  %s594_s15 = int_to_ptr.vmem [resolvable:$true] %s593_s15 }
  0x2b   : > { %v271_v5 = vunpack.c.l.bf16 %v255_v3  ;;  %v257_v6 = vld [vmem:[%s1252_s9 + $0x10] sm:$0xff]   ;;  %856 = vmatpush.bf16.msra.mxu2 %v806_v0  ;;  %857 = vmatpush.bf16.msra.mxu3 %v806_v0  ;;  %v804_v8 = vld [vmem:[%s1260_s29 + $0x28] sm:$0xff]  ;;  %v272_v10 = vunpack.c.h.bf16 %v255_v3  ;;  %v259_v13 = vld [vmem:[%s1252_s9 + $0x18] sm:$0xff]   ;;  %s595_s4 = sshll.u32 %s592_s23, 4  ;;  %s579_s5 = scalar_lea.sflag [#allocation4], %s1245_s0  ;;  %s596_s4 = int_to_ptr.hbm [resolvable:$true] %s595_s4 }
  0x2c   : > { %v273_v7 = vunpack.c.l.bf16 %v257_v6  ;;  %285 = vadd.xlane.f32.xlu0 %v269_v2  ;;  %v274_v11 = vunpack.c.h.bf16 %v257_v6  ;;  %v802_v14 = vld [vmem:[%s1260_s29 + $0x18] sm:$0xff]  ;;  %v261_v15 = vld [vmem:[%s1252_s9 + $0x20] sm:$0xf]  ;;  %v275_v16 = vunpack.c.l.bf16 %v259_v13  ;;  %v276_v17 = vunpack.c.h.bf16 %v259_v13  ;;  %v801_v19 = vld [vmem:[%s1260_s29 + $0x10] sm:$0xff]  ;;  %s1057_s22 = sshra.s32 %s596_s4, 4  ;;  %s1063_s30 = scalar_lea.hbm %s1365_s3, 128  ;;  %s1058_s22 = int_to_ptr.hbm [resolvable:$true] %s1057_s22 }
  0x2d   : > { %289 = vadd.xlane.f32.xlu1 %v271_v5  ;;  %v277_v18 = vunpack.c.l.bf16 %v261_v15  ;;  %v262_v20 = vld [vmem:[%s1252_s9 + $0x24] sm:$0xff]   ;;  %v264_v22 = vld [vmem:[%s1252_s9 + $0x2c] sm:$0xf]  ;;  %v793_v28 = vld [vmem:[%s1252_s9 + $0x10] sm:$0xff]  ;;  %s1059_s6 = scalar_lea.hbm %s1058_s22, 64  ;;  %p1064_p7 = scmp.lt.s32.totalorder %s1058_s22, %s1365_s3 }
  0x2e   : > { %293 = vadd.xlane.f32.xlu2 %v273_v7  ;;  %446 = vmatpush.bf16.msra.mxu0 %v805_v4  ;;  %v800_v21 = vld [vmem:[%s1260_s29 + $0x8] sm:$0xff]  ;;  %v278_v23 = vunpack.c.l.bf16 %v262_v20  ;;  %v279_v24 = vunpack.c.h.bf16 %v262_v20  ;;  %v280_v25 = vunpack.c.l.bf16 %v264_v22  ;;  %v799_v26 = vld [vmem:[%s1260_s29] sm:$0xff]  ;;  %v265_v29 = vld [vmem:[%s1252_s9 + $0x30] sm:$0xff]   ;;  %p1060_p4 = scmp.ne.s32.totalorder %s1058_s22, %s1059_s6  ;;  %p1065_p8 = scmp.lt.s32.totalorder %s1063_s30, %s1059_s6 }
  0x2f   : > { %858 = vmatpush.bf16.msra.mxu1 %v805_v4  ;;  %859 = vmatpush.bf16.msra.mxu2 %v805_v4  ;;  %v791_v27 = vld [vmem:[%s1252_s9] sm:$0xff]  ;;  %v797_v31 = vld [vmem:[%s1252_s9 + $0x30] sm:$0xff]  ;;  %v267_v32 = vld [vmem:[%s1252_s9 + $0x38] sm:$0xff]   ;;  %v281_v33 = vunpack.c.l.bf16 %v265_v29  ;;  %v282_v34 = vunpack.c.h.bf16 %v265_v29 }
  0x30   : > { %860 = vmatpush.bf16.msra.mxu3 %v805_v4  ;;  %v795_v30 = vld [vmem:[%s1252_s9 + $0x20] sm:$0xff]  ;;  %v283_v35 = vunpack.c.l.bf16 %v267_v32  ;;  %v284_v36 = vunpack.c.h.bf16 %v267_v32  ;;  %v792_v37 = vld [vmem:[%s1252_s9 + $0x8] sm:$0xff]  ;;  %v794_v38 = vld [vmem:[%s1252_s9 + $0x18] sm:$0xff]  ;;  %p1061_p5 = pnand %p1060_p4, %p1206_p9  ;;  %p1066_p10 = por %p1065_p8, %p1064_p7 }
  0x31   : > { %v796_v39 = vld [vmem:[%s1252_s9 + $0x28] sm:$0xff]  ;;  %v798_v40 = vld [vmem:[%s1252_s9 + $0x38] sm:$0xff]  ;;  %v1294_v5 = vld [vmem:[%s1364_s2] ss:$0 sm:$0xff] }
  0x32   : > { %447 = vmatpush.bf16.msra.mxu0 %v804_v8  ;;  %p1062_p6 = pneg %p1061_p5 }
  0x33   : > { %861 = vmatpush.bf16.msra.mxu1 %v804_v8  ;;  %862 = vmatpush.bf16.msra.mxu2 %v804_v8 }
  0x34   : > { %863 = vmatpush.bf16.msra.mxu3 %v804_v8  ;;  %287 = vadd.xlane.f32.xlu0 %v270_v9  ;;  %p1067_p13 = pnand %p1066_p10, %p1062_p6 }
  0x35   : > { %291 = vadd.xlane.f32.xlu1 %v272_v10 }
  0x36   : > { %295 = vadd.xlane.f32.xlu2 %v274_v11  ;;  %448 = vmatpush.bf16.msra.mxu0 %v803_v12 }
  0x37   : > { %864 = vmatpush.bf16.msra.mxu1 %v803_v12  ;;  %865 = vmatpush.bf16.msra.mxu2 %v803_v12 }
  0x38   : > { %866 = vmatpush.bf16.msra.mxu3 %v803_v12 }
  0x3a   : > { %449 = vmatpush.bf16.msra.mxu0 %v802_v14 }
  0x3b   : > { %867 = vmatpush.bf16.msra.mxu1 %v802_v14  ;;  %868 = vmatpush.bf16.msra.mxu2 %v802_v14 }
  0x3c   : > { %869 = vmatpush.bf16.msra.mxu3 %v802_v14  ;;  %297 = vadd.xlane.f32.xlu0 %v275_v16 }
  0x3d   : > { %299 = vadd.xlane.f32.xlu1 %v276_v17 }
  0x3e   : > { %301 = vadd.xlane.f32.xlu2 %v277_v18  ;;  %450 = vmatpush.bf16.msra.mxu0 %v801_v19 }
  0x3f   : > { %870 = vmatpush.bf16.msra.mxu1 %v801_v19  ;;  %871 = vmatpush.bf16.msra.mxu2 %v801_v19 }
  0x40   : > { %872 = vmatpush.bf16.msra.mxu3 %v801_v19 }
  0x42   : > { %451 = vmatpush.bf16.msra.mxu0 %v800_v21 }
  0x43   : > { %873 = vmatpush.bf16.msra.mxu1 %v800_v21  ;;  %874 = vmatpush.bf16.msra.mxu2 %v800_v21 }
  0x44   : > { %875 = vmatpush.bf16.msra.mxu3 %v800_v21  ;;  %303 = vadd.xlane.f32.xlu0 %v278_v23 }
  0x45   : > { %305 = vadd.xlane.f32.xlu1 %v279_v24 }
  0x46   : > { %307 = vadd.xlane.f32.xlu2 %v280_v25  ;;  %452 = vmatpush.bf16.msra.mxu0 %v799_v26 }
  0x47   : > { %876 = vmatpush.bf16.msra.mxu1 %v799_v26  ;;  %877 = vmatpush.bf16.msra.mxu2 %v799_v26 }
  0x48   : > { %878 = vmatpush.bf16.msra.mxu3 %v799_v26 }
  0x49   : > { %453 = vmatmul.bf16.vlgmr.msra.gmra.mxu0 %v791_v27 }
  0x4a   : > { %463 = vmatmul.bf16.vlgmr.msra.gmra.mxu1 %v793_v28  ;;  %473 = vmatmul.bf16.vlgmr.msra.gmra.mxu2 %v795_v30 }
  0x4b   : > { %483 = vmatmul.bf16.vlgmr.msra.gmra.mxu3 %v797_v31 }
  0x4c   : > { %309 = vadd.xlane.f32.xlu0 %v281_v33 }
  0x4d   : > { %311 = vadd.xlane.f32.xlu1 %v282_v34 }
  0x4e   : > { %313 = vadd.xlane.f32.xlu2 %v283_v35 }
  0x54   : > { %315 = vadd.xlane.f32.xlu0 %v284_v36 }
  0x59   : > { %458 = vmatmul.bf16.gmra.mxu0 %v792_v37 }
  0x5a   : > { %468 = vmatmul.bf16.gmra.mxu1 %v794_v38  ;;  %478 = vmatmul.bf16.gmra.mxu2 %v796_v39 }
  0x5b   : > { %488 = vmatmul.bf16.gmra.mxu3 %v798_v40 }
  0x9f   : > { %v286_v41 = vpop.xlane.xlu0 %285 }
  0xa0   : > { %v290_v42 = vpop.xlane.xlu1 %289  ;;  %v317_v52 = vadd.f32 1.0, %v286_v41 }
  0xa1   : > { %v294_v45 = vpop.xlane.xlu2 %293  ;;  %v319_v15 = vadd.f32 1.0, %v290_v42 }
  0xa2   : > { %v321_v53 = vadd.f32 1.0, %v294_v45  ;;  %951 = vrcp.f32 %v317_v52 }
  0xa4   : > { %953 = vrcp.f32 %v321_v53 }
  0xa7   : > { %v288_v43 = vpop.xlane.xlu0 %287 }
  0xa8   : > { %v292_v44 = vpop.xlane.xlu1 %291  ;;  %v318_v54 = vadd.f32 1.0, %v288_v43  ;;  %v952_v1 = vpop.eup %951 }
  0xa9   : > { %v296_v48 = vpop.xlane.xlu2 %295  ;;  %v320_v16 = vadd.f32 1.0, %v292_v44 }
  0xaa   : > { %v322_v55 = vadd.f32 1.0, %v296_v48  ;;  %955 = vrcp.f32 %v318_v54  ;;  %v954_v2 = vpop.eup %953 }
  0xac   : > { %957 = vrcp.f32 %v322_v55 }
  0xaf   : > { %v298_v46 = vpop.xlane.xlu0 %297 }
  0xb0   : > { %v300_v47 = vpop.xlane.xlu1 %299  ;;  %v956_v3 = vpop.eup %955  ;;  %v323_v23 = vadd.f32 1.0, %v298_v46 }
  0xb1   : > { %v302_v51 = vpop.xlane.xlu2 %301  ;;  %v324_v25 = vadd.f32 1.0, %v300_v47 }
  0xb2   : > { %v325_v58 = vadd.f32 1.0, %v302_v51  ;;  %v958_v9 = vpop.eup %957 }
  0xb4   : > { %959 = vrcp.f32 %v325_v58 }
  0xb7   : > { %v304_v49 = vpop.xlane.xlu0 %303 }
  0xb8   : > { %v306_v50 = vpop.xlane.xlu1 %305  ;;  %v326_v62 = vadd.f32 1.0, %v304_v49 }
  0xb9   : > { %v308_v0 = vpop.xlane.xlu2 %307  ;;  %v327_v34 = vadd.f32 1.0, %v306_v50 }
  0xba   : > { %v960_v14 = vpop.eup %959  ;;  %v328_v49 = vadd.f32 1.0, %v308_v0 }
  0xbf   : > { %v310_v56 = vpop.xlane.xlu0 %309 }
  0xc0   : > { %v312_v57 = vpop.xlane.xlu1 %311  ;;  %v329_v61 = vadd.f32 1.0, %v310_v56 }
  0xc1   : > { %v330_v63 = vadd.f32 1.0, %v312_v57  ;;  %v314_v30 = vpop.xlane.xlu2 %313 }
  0xc2   : > { %961 = vrcp.f32 %v329_v61  ;;  %v331_v39 = vadd.f32 1.0, %v314_v30 }
  0xc3   : > { %963 = vrcp.f32 %v326_v62 }
  0xc4   : > { %965 = vrcp.f32 %v330_v63 }
  0xc5   : > { %967 = vrcp.f32 %v319_v15 }
  0xc6   : > { %v454_v59 = vpop.f32.mrf.mxu0  ;;  %969 = vrcp.f32 %v320_v16 }
  0xc7   : > { %v464_v60 = vpop.f32.mrf.mxu1  ;;  %v510_v4 = vmul.f32 %v952_v1, %v454_v59  ;;  %v316_v31 = vpop.xlane.xlu0 %315  ;;  %971 = vrcp.f32 %v323_v23 }
  0xc8   : > { %v514_v6 = vmul.f32 %v954_v2, %v464_v60  ;;  %v962_v17 = vpop.eup %961  ;;  %973 = vrcp.f32 %v324_v25  ;;  %v332_v44 = vadd.f32 1.0, %v316_v31 }
  0xc9   : > { %v530_v18 = vadd.f32 %v1294_v5, %v510_v4  ;;  %v964_v22 = vpop.eup %963  ;;  %975 = vrcp.f32 %v327_v34 }
  0xca   : > { %v534_v19 = vadd.f32 %v1294_v5, %v514_v6  ;;  %v966_v24 = vpop.eup %965  ;;  %977 = vrcp.f32 %v331_v39 }
  0xcb   : > { %v968_v45 = vpop.eup %967  ;;  %979 = vrcp.f32 %v332_v44 }
  0xcc   : > { %v970_v48 = vpop.eup %969  ;;  %981 = vrcp.f32 %v328_v49 }
  0xcd   : > { %v474_v7 = vpop.f32.mrf.mxu2  ;;  %v972_v50 = vpop.eup %971 }
  0xce   : > { %v484_v8 = vpop.f32.mrf.mxu3  ;;  %v456_v10 = vpop.f32.mrf.mxu0  ;;  %v518_v28 = vmul.f32 %v960_v14, %v474_v7 }
  0xcf   : > { %v466_v11 = vpop.f32.mrf.mxu1  ;;  %v511_v12 = vmul.f32 %v956_v3, %v456_v10  ;;  %v522_v29 = vmul.f32 %v962_v17, %v484_v8  ;;  %v974_v51 = vpop.eup %973 }
  0xd0   : > { %v515_v13 = vmul.f32 %v958_v9, %v466_v11  ;;  %v538_v40 = vadd.f32 %v1294_v5, %v518_v28  ;;  %v976_v60 = vpop.eup %975 }
  0xd1   : > { %v531_v20 = vadd.f32 %v1294_v5, %v511_v12  ;;  %v542_v41 = vadd.f32 %v1294_v5, %v522_v29  ;;  %v978_v61 = vpop.eup %977 }
  0xd2   : > { %v535_v21 = vadd.f32 %v1294_v5, %v515_v13  ;;  %v980_v2 = vpop.eup %979 }
  0xd3   : > { %v811_v26 = vpack.c.bf16 %v531_v20, %v530_v18  ;;  %v982_v8 = vpop.eup %981 }
  0xd4   : > { %v821_v27 = vpack.c.bf16 %v535_v21, %v534_v19 }
  0xd5   : > { %812 = vst [vmem:[%s1301_s11] sm:$0xff] %v811_v26   ;;  %v476_v32 = vpop.f32.mrf.mxu2 }
  0xd6   : > { %v486_v33 = vpop.f32.mrf.mxu3  ;;  %849 = vst [vmem:[%s1301_s11 + $0x10] sm:$0xff] %v821_v27   ;;  %v519_v35 = vmul.f32 %v964_v22, %v476_v32  ;;  %v459_v37 = vpop.f32.mrf.mxu0 }
  0xd7   : > { %v523_v36 = vmul.f32 %v966_v24, %v486_v33  ;;  %v469_v38 = vpop.f32.mrf.mxu1  ;;  %v512_v52 = vmul.f32 %v968_v45, %v459_v37 }
  0xd8   : > { %v539_v42 = vadd.f32 %v1294_v5, %v519_v35  ;;  %v516_v53 = vmul.f32 %v972_v50, %v469_v38 }
  0xd9   : > { %v543_v43 = vadd.f32 %v1294_v5, %v523_v36  ;;  %v532_v62 = vadd.f32 %v1294_v5, %v512_v52 }
  0xda   : > { %v831_v46 = vpack.c.bf16 %v539_v42, %v538_v40  ;;  %v536_v63 = vadd.f32 %v1294_v5, %v516_v53 }
  0xdb   : > { %v841_v47 = vpack.c.bf16 %v543_v43, %v542_v41 }
  0xdc   : > { %851 = vst [vmem:[%s1301_s11 + $0x20] sm:$0xff] %v831_v46  }
  0xdd   : > { %853 = vst [vmem:[%s1301_s11 + $0x30] sm:$0xff] %v841_v47   ;;  %v479_v54 = vpop.f32.mrf.mxu2 }
  0xde   : > { %v489_v55 = vpop.f32.mrf.mxu3  ;;  %v461_v56 = vpop.f32.mrf.mxu0  ;;  %v520_v6 = vmul.f32 %v976_v60, %v479_v54 }
  0xdf   : > { %v471_v57 = vpop.f32.mrf.mxu1  ;;  %v513_v58 = vmul.f32 %v970_v48, %v461_v56  ;;  %v524_v7 = vmul.f32 %v978_v61, %v489_v55 }
  0xe0   : > { %v517_v59 = vmul.f32 %v974_v51, %v471_v57  ;;  %v540_v13 = vadd.f32 %v1294_v5, %v520_v6 }
  0xe1   : > { %v533_v0 = vadd.f32 %v1294_v5, %v513_v58  ;;  %v544_v14 = vadd.f32 %v1294_v5, %v524_v7 }
  0xe2   : > { %v537_v1 = vadd.f32 %v1294_v5, %v517_v59 }
  0xe3   : > { %v816_v3 = vpack.c.bf16 %v533_v0, %v532_v62 }
  0xe4   : > { %v826_v4 = vpack.c.bf16 %v537_v1, %v536_v63 }
  0xe5   : > { %848 = vst [vmem:[%s1301_s11 + $0x8] sm:$0xff] %v816_v3   ;;  %v481_v9 = vpop.f32.mrf.mxu2 }
  0xe6   : > { %v491_v10 = vpop.f32.mrf.mxu3  ;;  %850 = vst [vmem:[%s1301_s11 + $0x18] sm:$0xff] %v826_v4   ;;  %v521_v11 = vmul.f32 %v982_v8, %v481_v9 }
  0xe7   : > { %v525_v12 = vmul.f32 %v980_v2, %v491_v10 }
  0xe8   : > { %v541_v15 = vadd.f32 %v1294_v5, %v521_v11 }
  0xe9   : > { %v545_v16 = vadd.f32 %v1294_v5, %v525_v12 }
  0xea   : > { %v836_v17 = vpack.c.bf16 %v541_v15, %v540_v13 }
  0xeb   : > { %v846_v18 = vpack.c.bf16 %v545_v16, %v544_v14 }
  0xec   : > { %852 = vst [vmem:[%s1301_s11 + $0x28] sm:$0xff] %v836_v17  }
  0xed   : > { %854 = vst [vmem:[%s1301_s11 + $0x38] sm:$0xff] %v846_v18  }
  0xee   : > { %1070 = shalt.err (!%p1067_p13)
}
  0xef   : > { %s1133_s0 = smov 64   ;;  %s1134_s29 = smov 4  }
  0xf0   : > { %883 = dma.vmem_to_hbm [thread:$0]  (%p1206_p9), %s594_s15, 1024, %s596_s4, %s579_s5, %s1133_s0, %s1133_s0, %s1134_s29  }
  0xf1 PF: > { %s610_s24 = sand.u32 1, %s1109_s12   ;;  %p893_p0 = pnand %p709_p12, %p1213_p11 }
  0xf2   : > { %s611_s10 = scalar_lea.sflag [#allocation4], %s610_s24 }
  0xf3   : > { %p894_p1 = pneg %p893_p0 }
  0xf5   : > { %1104 = dma.done.wait (%p894_p1), %s611_s10, 1024  }
  0xf6   : > { %1106 = vsyncadd (%p894_p1), %s611_s10, 4294966272  ;;  %s22_s17 = sadd.s32 1, %s1129_s17   ;;  %s1373_s12 = smov %s1113_s13 }
  0xf7   : > { %p19_p2 = scmp.ge.s32.totalorder %s22_s17, 4   ;;  %s1374_s13 = smov %s1117_s14 }
  0xf8   : > { %s1375_s14 = smov %s1211_s26  ;;  %s1376_s15 = smov %s1125_s16 }
  0xf9   : > { %s1377_s16 = smov %s1379_s20  ;;  %21 = sbr.rel (!%p19_p2) target bundleno = 10 (0xa), region = 90 }
  0xfe   :  { %617 = vsyncpa [#allocation3], 1 }
  0xff   :  { %619 = vsyncpa [#allocation3 + $0x1], 1 }
 0x100   :  { %620 = vsyncpa [#allocation6], 1 }
 0x101   :  { %622 = vsyncpa [#allocation6 + $0x1], 1 }
 0x102   :  { %623 = vsyncpa [#allocation4], 1 }
 0x103   :  { %625 = vsyncpa [#allocation4 + $0x1], 1 }

</bundles_post_ra>
